<compile_context>
chip_gen: v5e
topology: v5e:2x2
jax: 0.10.0
libtpu: 0.0.40
codegen_flags: <defaults>
</compile_context>

<pallas_src>
import functools

import jax
import jax.numpy as jnp
from jax.experimental import pallas as pl
from jax.experimental.pallas import tpu as pltpu

_SUB = 256  # lanes per in-kernel sub-chunk (bounds live vregs to ~40)


def _vq_kernel(x_ref, cb_ref, cbt_ref, c2_ref, xd_ref, cnt_ref, err_ref, *,
               t_valid, t_eff, sub):
    t_i = pl.program_id(1)

    # Per-batch resident accumulator blocks: zero them at the first T block of
    # each n (block index changes with n, so this re-runs per batch element).
    @pl.when(t_i == 0)
    def _():
        cnt_ref[...] = jnp.zeros_like(cnt_ref)
        err_ref[...] = jnp.zeros_like(err_ref)

    cb = cb_ref[...]          # (K, D)
    cbt = cbt_ref[...]        # (D, K)   codebook^T (grid-invariant input)
    c2h = c2_ref[...]         # (K, 1)   0.5 * |cb|^2 (grid-invariant input)
    K = cb.shape[0]
    D = cb.shape[1]
    n_sub = t_eff // sub

    def body(c, carry):
        cnt_acc, err_acc = carry
        start = pl.multiple_of(c * sub, sub)
        x = x_ref[0, :, pl.ds(start, sub)]                       # (D, sub)

        # Mask columns beyond T (edge grid block): garbage lanes -> 0 so no
        # NaN/Inf can leak into the matmuls or the statistics.
        col = (t_i * t_eff + start
               + jax.lax.broadcasted_iota(jnp.int32, (1, sub), 1))
        valid = col < t_valid                                     # (1, sub)
        x = jnp.where(valid, x, 0.0)

        # Reduced distance: argmin_k (0.5*|cb_k|^2 - cb_k . x) (argmin-equal
        # to |x|^2 - 2 cb.x + |cb|^2 up to a per-token constant / scale).
        xc = jnp.dot(cb, x, preferred_element_type=jnp.float32)  # (K, sub)
        dist = c2h - xc

        # First-occurrence argmin over codes (K on sublanes), then one-hot.
        dmin = jnp.min(dist, axis=0, keepdims=True)               # (1, sub)
        iota_a = jax.lax.broadcasted_iota(jnp.int32, (K, sub), 0)
        idx = jnp.min(jnp.where(dist == dmin, iota_a, K),
                      axis=0, keepdims=True)                      # (1, sub)
        idx = jnp.where(valid, idx, K)       # padded columns select no code
        iota_b = jax.lax.broadcasted_iota(jnp.int32, (K, sub), 0)
        onehot = (iota_b == idx).astype(jnp.float32)              # (K, sub)

        # Dequantize on the MXU: (D, sub) = codebook^T @ onehot, written
        # channels-first (lane-dense) straight into the output block.
        xd = jnp.dot(cbt, onehot, preferred_element_type=jnp.float32)
        xd_ref[0, :, pl.ds(start, sub)] = xd.astype(xd_ref.dtype)

        # Lane-dense partial statistics: VPU-add 128-lane slices (no XLU lane
        # reductions, no masking multiplies -- padded columns are already 0).
        diff = x - xd
        d2 = diff * diff                                          # (D, sub)
        for j in range(sub // 128):
            sl = slice(j * 128, (j + 1) * 128)
            cnt_acc = cnt_acc + onehot[:, sl]
            err_acc = err_acc + d2[:, sl]
        return cnt_acc, err_acc

    cnt0 = jnp.zeros((K, 128), jnp.float32)
    err0 = jnp.zeros((D, 128), jnp.float32)
    cnt_p, err_p = jax.lax.fori_loop(0, n_sub, body, (cnt0, err0), unroll=True)

    cnt_ref[0] = cnt_ref[0] + cnt_p
    err_ref[0] = err_ref[0] + err_p


def quantize_ema_reset_forward(x, codebook, *, t_tile=2048):
    """Eval-mode forward of QuantizeEMAReset.

    x:        (N, width, T) float32, width == code_dim
    codebook: (nb_code, code_dim) float32
    returns:  (x_d (N, width, T), commit_loss scalar, perplexity scalar)
    """
    N, width, T = x.shape
    K, D = codebook.shape
    assert width == D, "width must equal code_dim"
    assert t_tile % _SUB == 0 and t_tile >= _SUB

    x = x.astype(jnp.float32)
    cb = codebook.astype(jnp.float32)
    cbt = jnp.transpose(cb)                                   # (D, K)
    c2h = 0.5 * jnp.sum(cb * cb, axis=-1, keepdims=True)      # (K, 1)

    # DMA block length along T: multiple of the sub-chunk (hence of 128),
    # clamped to roughly cover T.  No host-side padding; edge blocks are
    # handled by in-kernel masking + Pallas writeback clipping.
    t_eff = min(t_tile, pl.cdiv(T, _SUB) * _SUB)
    grid = (N, pl.cdiv(T, t_eff))

    kernel = functools.partial(_vq_kernel, t_valid=T, t_eff=t_eff, sub=_SUB)

    xd, counts, sqerr = pl.pallas_call(
        kernel,
        out_shape=(
            jax.ShapeDtypeStruct((N, D, T), jnp.float32),
            jax.ShapeDtypeStruct((N, K, 128), jnp.float32),
            jax.ShapeDtypeStruct((N, D, 128), jnp.float32),
        ),
        grid_spec=pltpu.PrefetchScalarGridSpec(
            num_scalar_prefetch=0,
            grid=grid,
            in_specs=[
                pl.BlockSpec((1, D, t_eff), lambda n, t: (n, 0, t)),
                pl.BlockSpec((K, D), lambda n, t: (0, 0)),
                pl.BlockSpec((D, K), lambda n, t: (0, 0)),
                pl.BlockSpec((K, 1), lambda n, t: (0, 0)),
            ],
            out_specs=[
                pl.BlockSpec((1, D, t_eff), lambda n, t: (n, 0, t)),
                pl.BlockSpec((1, K, 128), lambda n, t: (n, 0, 0)),
                pl.BlockSpec((1, D, 128), lambda n, t: (n, 0, 0)),
            ],
        ),
        # N axis is truly independent (per-n partial accumulators) -> parallel
        # for megacore on v7x; the T reduction axis stays arbitrary.
        compiler_params=pltpu.CompilerParams(
            dimension_semantics=("parallel", "arbitrary")),
    )(x, cb, cbt, c2h)

    # Final tiny reductions of the lane-dense partials (done once, host-side
    # of the kernel, on (N,K,128)/(N,D,128) arrays).
    code_count = jnp.sum(counts, axis=(0, 2))                 # (K,)
    prob = code_count / jnp.sum(code_count)
    perplexity = jnp.exp(-jnp.sum(prob * jnp.log(prob + 1e-7)))

    commit_loss = jnp.sum(sqerr) / (N * T * D)                # F.mse_loss mean

    # x_d = x + (x_d - x).detach()  -- numerically equal to x_d in forward
    return xd, commit_loss, perplexity


def _ref_forward(x, cb):
    """Pure-JAX reference mirroring the PyTorch eval-mode forward."""
    N, D, T = x.shape
    xf = jnp.transpose(x, (0, 2, 1)).reshape(-1, D)
    dist = (jnp.sum(xf * xf, axis=-1, keepdims=True)
            - 2.0 * xf @ cb.T + jnp.sum(cb * cb, axis=-1)[None, :])
    idx = jnp.argmin(dist, axis=-1)
    xd = cb[idx]
    code_count = jnp.sum(jax.nn.one_hot(idx, cb.shape[0], dtype=jnp.float32),
                         axis=0)
    prob = code_count / jnp.sum(code_count)
    perp = jnp.exp(-jnp.sum(prob * jnp.log(prob + 1e-7)))
    loss = jnp.mean((xf - xd) ** 2)
    xd = xd.reshape(N, T, D).transpose(0, 2, 1)
    return xd, loss, perp


if __name__ == "__main__":
    nb_code, code_dim, mu = 32, 16, 0.99   # mu unused in eval-mode forward
    N, T = 2, 200                          # T not 128-aligned -> exercises edge masking

    key = jax.random.PRNGKey(0)
    kx, kcb = jax.random.split(key)
    x = jax.random.normal(kx, (N, code_dim, T), dtype=jnp.float32)
    # deterministic synthetic codebook (module init is zeros; use a fixed
    # random codebook so the argmin is non-degenerate)
    codebook = jax.random.normal(kcb, (nb_code, code_dim), dtype=jnp.float32)

    x_d, commit_loss, perplexity = quantize_ema_reset_forward(x, codebook)
    jax.block_until_ready((x_d, commit_loss, perplexity))

    assert x_d.shape == (N, code_dim, T)
    assert commit_loss.shape == ()
    assert perplexity.shape == ()

    # numerical check vs. pure-JAX reference (loose tolerances allow rare
    # near-tie argmin flips from the reduced distance formula).
    xd_r, loss_r, perp_r = _ref_forward(x, codebook)
    match_frac = float(jnp.mean((jnp.abs(x_d - xd_r) < 1e-4).astype(jnp.float32)))
    assert match_frac > 0.99, f"x_d mismatch fraction too high: {1 - match_frac}"
    assert abs(float(commit_loss) - float(loss_r)) < 1e-3 * max(1.0, abs(float(loss_r)))
    assert abs(float(perplexity) - float(perp_r)) < 1e-2 * max(1.0, float(perp_r))

    print("KERNEL_OK")
</pallas_src>

<mosaic_0001>
module attributes {stable_mosaic.version = 11 : i64} {
  func.func @_vq_kernel(%arg0: i32, %arg1: i32, %arg2: memref<1x16x256xf32, #tpu.memory_space<vmem>>, %arg3: memref<32x16xf32, #tpu.memory_space<vmem>>, %arg4: memref<16x32xf32, #tpu.memory_space<vmem>>, %arg5: memref<32x1xf32, #tpu.memory_space<vmem>>, %arg6: memref<1x16x256xf32, #tpu.memory_space<vmem>>, %arg7: memref<1x32x128xf32, #tpu.memory_space<vmem>>, %arg8: memref<1x16x128xf32, #tpu.memory_space<vmem>>) attributes {dimension_semantics = [#tpu.dimension_semantics<parallel>, #tpu.dimension_semantics<arbitrary>], iteration_bounds = array<i64: 2, 1>, scalar_prefetch = 0 : i64, scratch_operands = 0 : i64, tpu.core_type = #tpu.core_type<tc>, window_params = [{transform_indices = @transform_0, window_bounds = array<i64: 1, 16, 256>}, {pipeline_mode = #tpu.pipeline_mode<synchronous>, transform_indices = @transform_1, window_bounds = array<i64: 32, 16>}, {pipeline_mode = #tpu.pipeline_mode<synchronous>, transform_indices = @transform_2, window_bounds = array<i64: 16, 32>}, {pipeline_mode = #tpu.pipeline_mode<synchronous>, transform_indices = @transform_3, window_bounds = array<i64: 32, 1>}, {transform_indices = @transform_4, window_bounds = array<i64: 1, 16, 256>}, {transform_indices = @transform_5, window_bounds = array<i64: 1, 32, 128>}, {transform_indices = @transform_6, window_bounds = array<i64: 1, 16, 128>}]} {
    %c0_i32 = arith.constant 0 : i32
    %0 = arith.cmpi eq, %arg1, %c0_i32 : i32
    %1 = arith.extui %0 : i1 to i32
    %c0_i32_0 = arith.constant 0 : i32
    %2 = arith.cmpi ne, %1, %c0_i32_0 : i32
    scf.if %2 {
      %cst_31 = arith.constant 0.000000e+00 : f32
      %70 = vector.broadcast %cst_31 : f32 to vector<1x32x128xf32>
      %c0_32 = arith.constant 0 : index
      %c0_33 = arith.constant 0 : index
      %c0_34 = arith.constant 0 : index
      %71 = vector.load %arg7[%c0_32, %c0_33, %c0_34] : memref<1x32x128xf32, #tpu.memory_space<vmem>>, vector<1x32x128xf32>
      tpu.vector_store %arg7[%c0_32, %c0_33, %c0_34], %70 {strides = array<i32>} : memref<1x32x128xf32, #tpu.memory_space<vmem>>, vector<1x32x128xf32>,
      %cst_35 = arith.constant 0.000000e+00 : f32
      %72 = vector.broadcast %cst_35 : f32 to vector<1x16x128xf32>
      %c0_36 = arith.constant 0 : index
      %c0_37 = arith.constant 0 : index
      %c0_38 = arith.constant 0 : index
      %73 = vector.load %arg8[%c0_36, %c0_37, %c0_38] : memref<1x16x128xf32, #tpu.memory_space<vmem>>, vector<1x16x128xf32>
      tpu.vector_store %arg8[%c0_36, %c0_37, %c0_38], %72 {strides = array<i32>} : memref<1x16x128xf32, #tpu.memory_space<vmem>>, vector<1x16x128xf32>,
    } else {
    }
    %c0 = arith.constant 0 : index
    %c0_1 = arith.constant 0 : index
    %3 = vector.load %arg3[%c0, %c0_1] : memref<32x16xf32, #tpu.memory_space<vmem>>, vector<32x16xf32>
    %c0_2 = arith.constant 0 : index
    %c0_3 = arith.constant 0 : index
    %4 = vector.load %arg4[%c0_2, %c0_3] : memref<16x32xf32, #tpu.memory_space<vmem>>, vector<16x32xf32>
    %c0_4 = arith.constant 0 : index
    %c0_5 = arith.constant 0 : index
    %5 = vector.load %arg5[%c0_4, %c0_5] : memref<32x1xf32, #tpu.memory_space<vmem>>, vector<32x1xf32>
    %cst = arith.constant 0.000000e+00 : f32
    %6 = vector.broadcast %cst : f32 to vector<32x128xf32>
    %cst_6 = arith.constant 0.000000e+00 : f32
    %7 = vector.broadcast %cst_6 : f32 to vector<16x128xf32>
    %c0_i32_7 = arith.constant 0 : i32
    %c256_i32 = arith.constant 256 : i32
    %8 = arith.muli %c0_i32_7, %c256_i32 : i32
    %9 = tpu.assume_multiple %8, 256 : i32
    %c0_8 = arith.constant 0 : index
    %c0_9 = arith.constant 0 : index
    %10 = arith.index_cast %9 : i32 to index
    %11 = vector.load %arg2[%c0_8, %c0_9, %10] : memref<1x16x256xf32, #tpu.memory_space<vmem>>, vector<1x16x256xf32>
    %12 = vector.shape_cast %11 : vector<1x16x256xf32> to vector<16x256xf32>
    %c256_i32_10 = arith.constant 256 : i32
    %13 = arith.muli %arg1, %c256_i32_10 : i32
    %14 = arith.addi %13, %9 : i32
    %15 = tpu.iota {dimensions = array<i32: 1>} : vector<1x256xi32>
    %16 = vector.broadcast %14 : i32 to vector<1x256xi32>
    %17 = arith.addi %16, %15 : vector<1x256xi32>
    %c200_i32 = arith.constant 200 : i32
    %18 = vector.broadcast %c200_i32 : i32 to vector<1x256xi32>
    %19 = arith.cmpi slt, %17, %18 : vector<1x256xi32>
    %cst_11 = arith.constant 0.000000e+00 : f32
    %20 = vector.shape_cast %19 : vector<1x256xi1> to vector<1x256xi1>
    %21 = vector.broadcast %20 : vector<1x256xi1> to vector<16x256xi1>
    %22 = vector.broadcast %cst_11 : f32 to vector<16x256xf32>
    %23 = arith.select %21, %12, %22 : vector<16x256xi1>, vector<16x256xf32>
    %cst_12 = arith.constant dense<0.000000e+00> : vector<32x256xf32>
    %24 = tpu.matmul %3, %23, %cst_12 {dimension_numbers = #tpu.dot_dimension_numbers<[1], [0], [0], [1], [0, 0, 1, 1], [], []>} : vector<32x16xf32>, vector<16x256xf32>, vector<32x256xf32> -> vector<32x256xf32>
    %25 = vector.broadcast %5 : vector<32x1xf32> to vector<32x256xf32>
    %26 = arith.subf %25, %24 : vector<32x256xf32>
    %cst_13 = arith.constant dense<0x7F800000> : vector<256xf32>
    %27 = vector.multi_reduction <minimumf>, %26, %cst_13 [0] : vector<32x256xf32> to vector<256xf32>
    %28 = vector.shape_cast %27 : vector<256xf32> to vector<1x256xf32>
    %29 = tpu.iota {dimensions = array<i32: 0>} : vector<32x256xi32>
    %30 = vector.broadcast %28 : vector<1x256xf32> to vector<32x256xf32>
    %31 = arith.cmpf oeq, %26, %30 : vector<32x256xf32>
    %c32_i32 = arith.constant 32 : i32
    %32 = vector.broadcast %c32_i32 : i32 to vector<32x256xi32>
    %33 = arith.select %31, %29, %32 : vector<32x256xi1>, vector<32x256xi32>
    %cst_14 = arith.constant dense<2147483647> : vector<256xi32>
    %34 = vector.multi_reduction <minsi>, %33, %cst_14 [0] : vector<32x256xi32> to vector<256xi32>
    %35 = vector.shape_cast %34 : vector<256xi32> to vector<1x256xi32>
    %c32_i32_15 = arith.constant 32 : i32
    %36 = vector.broadcast %c32_i32_15 : i32 to vector<1x256xi32>
    %37 = arith.select %19, %35, %36 : vector<1x256xi1>, vector<1x256xi32>
    %38 = tpu.iota {dimensions = array<i32: 0>} : vector<32x256xi32>
    %39 = vector.broadcast %37 : vector<1x256xi32> to vector<32x256xi32>
    %40 = arith.cmpi eq, %38, %39 : vector<32x256xi32>
    %41 = arith.extui %40 : vector<32x256xi1> to vector<32x256xi32>
    %42 = arith.sitofp %41 : vector<32x256xi32> to vector<32x256xf32>
    %cst_16 = arith.constant dense<0.000000e+00> : vector<16x256xf32>
    %43 = tpu.matmul %4, %42, %cst_16 {dimension_numbers = #tpu.dot_dimension_numbers<[1], [0], [0], [1], [0, 0, 1, 1], [], []>} : vector<16x32xf32>, vector<32x256xf32>, vector<16x256xf32> -> vector<16x256xf32>
    %c0_17 = arith.constant 0 : index
    %c0_18 = arith.constant 0 : index
    %44 = arith.index_cast %9 : i32 to index
    %45 = vector.load %arg6[%c0_17, %c0_18, %44] : memref<1x16x256xf32, #tpu.memory_space<vmem>>, vector<1x16x256xf32>
    %46 = vector.shape_cast %45 : vector<1x16x256xf32> to vector<16x256xf32>
    %47 = vector.shape_cast %43 : vector<16x256xf32> to vector<1x16x256xf32>
    tpu.vector_store %arg6[%c0_17, %c0_18, %44], %47 {strides = array<i32>} : memref<1x16x256xf32, #tpu.memory_space<vmem>>, vector<1x16x256xf32>,
    %48 = arith.subf %23, %43 : vector<16x256xf32>
    %49 = arith.mulf %48, %48 : vector<16x256xf32>
    %50 = vector.extract_strided_slice %42 {offsets = [0, 0], sizes = [32, 128], strides = [1, 1]} : vector<32x256xf32> to vector<32x128xf32>
    %51 = arith.addf %6, %50 : vector<32x128xf32>
    %52 = vector.extract_strided_slice %49 {offsets = [0, 0], sizes = [16, 128], strides = [1, 1]} : vector<16x256xf32> to vector<16x128xf32>
    %53 = arith.addf %7, %52 : vector<16x128xf32>
    %54 = vector.extract_strided_slice %42 {offsets = [0, 128], sizes = [32, 128], strides = [1, 1]} : vector<32x256xf32> to vector<32x128xf32>
    %55 = arith.addf %51, %54 : vector<32x128xf32>
    %56 = vector.extract_strided_slice %49 {offsets = [0, 128], sizes = [16, 128], strides = [1, 1]} : vector<16x256xf32> to vector<16x128xf32>
    %57 = arith.addf %53, %56 : vector<16x128xf32>
    %c1_i32 = arith.constant 1 : i32
    %c0_19 = arith.constant 0 : index
    %c0_20 = arith.constant 0 : index
    %c0_21 = arith.constant 0 : index
    %58 = vector.load %arg7[%c0_19, %c0_20, %c0_21] : memref<1x32x128xf32, #tpu.memory_space<vmem>>, vector<1x32x128xf32>
    %59 = vector.shape_cast %58 : vector<1x32x128xf32> to vector<32x128xf32>
    %60 = arith.addf %59, %55 : vector<32x128xf32>
    %c0_22 = arith.constant 0 : index
    %c0_23 = arith.constant 0 : index
    %c0_24 = arith.constant 0 : index
    %61 = vector.load %arg7[%c0_22, %c0_23, %c0_24] : memref<1x32x128xf32, #tpu.memory_space<vmem>>, vector<1x32x128xf32>
    %62 = vector.shape_cast %61 : vector<1x32x128xf32> to vector<32x128xf32>
    %63 = vector.shape_cast %60 : vector<32x128xf32> to vector<1x32x128xf32>
    tpu.vector_store %arg7[%c0_22, %c0_23, %c0_24], %63 {strides = array<i32>} : memref<1x32x128xf32, #tpu.memory_space<vmem>>, vector<1x32x128xf32>,
    %c0_25 = arith.constant 0 : index
    %c0_26 = arith.constant 0 : index
    %c0_27 = arith.constant 0 : index
    %64 = vector.load %arg8[%c0_25, %c0_26, %c0_27] : memref<1x16x128xf32, #tpu.memory_space<vmem>>, vector<1x16x128xf32>
    %65 = vector.shape_cast %64 : vector<1x16x128xf32> to vector<16x128xf32>
    %66 = arith.addf %65, %57 : vector<16x128xf32>
    %c0_28 = arith.constant 0 : index
    %c0_29 = arith.constant 0 : index
    %c0_30 = arith.constant 0 : index
    %67 = vector.load %arg8[%c0_28, %c0_29, %c0_30] : memref<1x16x128xf32, #tpu.memory_space<vmem>>, vector<1x16x128xf32>
    %68 = vector.shape_cast %67 : vector<1x16x128xf32> to vector<16x128xf32>
    %69 = vector.shape_cast %66 : vector<16x128xf32> to vector<1x16x128xf32>
    tpu.vector_store %arg8[%c0_28, %c0_29, %c0_30], %69 {strides = array<i32>} : memref<1x16x128xf32, #tpu.memory_space<vmem>>, vector<1x16x128xf32>,
    return
  }
  func.func @transform_0(%arg0: i32, %arg1: i32) -> (i32, i32, i32) {
    %c0_i32 = arith.constant 0 : i32
    %c0_i32_0 = arith.constant 0 : i32
    return %arg0, %c0_i32, %arg1 : i32, i32, i32
  }
  func.func @transform_1(%arg0: i32, %arg1: i32) -> (i32, i32) {
    %c0_i32 = arith.constant 0 : i32
    %c0_i32_0 = arith.constant 0 : i32
    %c0_i32_1 = arith.constant 0 : i32
    return %c0_i32, %c0_i32_0 : i32, i32
  }
  func.func @transform_2(%arg0: i32, %arg1: i32) -> (i32, i32) {
    %c0_i32 = arith.constant 0 : i32
    %c0_i32_0 = arith.constant 0 : i32
    %c0_i32_1 = arith.constant 0 : i32
    return %c0_i32, %c0_i32_0 : i32, i32
  }
  func.func @transform_3(%arg0: i32, %arg1: i32) -> (i32, i32) {
    %c0_i32 = arith.constant 0 : i32
    %c0_i32_0 = arith.constant 0 : i32
    %c0_i32_1 = arith.constant 0 : i32
    return %c0_i32, %c0_i32_0 : i32, i32
  }
  func.func @transform_4(%arg0: i32, %arg1: i32) -> (i32, i32, i32) {
    %c0_i32 = arith.constant 0 : i32
    %c0_i32_0 = arith.constant 0 : i32
    return %arg0, %c0_i32, %arg1 : i32, i32, i32
  }
  func.func @transform_5(%arg0: i32, %arg1: i32) -> (i32, i32, i32) {
    %c0_i32 = arith.constant 0 : i32
    %c0_i32_0 = arith.constant 0 : i32
    %c0_i32_1 = arith.constant 0 : i32
    return %arg0, %c0_i32, %c0_i32_0 : i32, i32, i32
  }
  func.func @transform_6(%arg0: i32, %arg1: i32) -> (i32, i32, i32) {
    %c0_i32 = arith.constant 0 : i32
    %c0_i32_0 = arith.constant 0 : i32
    %c0_i32_1 = arith.constant 0 : i32
    return %arg0, %c0_i32, %c0_i32_0 : i32, i32, i32
  }
}

</mosaic_0001>

<bundles_post_ra>
// kernel: tpu_custom_call.1
= control target key start
LH: loop header
LB: loop body
LE: loop exit
PB: predicated region body
PF: predicated region fallthrough
CT: control target
= control target key end

     0   :  { %s1418_s0 = inlined_call_operand.vmem [shape: f32[2,16,200], index: 0, kind: input, shape index: {}]   ;;  %s1419_s1 = inlined_call_operand.vmem [shape: f32[32,16], index: 1, kind: input, shape index: {}]   ;;  %s1420_s2 = inlined_call_operand.vmem [shape: f32[16,32], index: 2, kind: input, shape index: {}]   ;;  %s1421_s3 = inlined_call_operand.vmem [shape: f32[32,1], index: 3, kind: input, shape index: {}]   ;;  %s1422_s4 = inlined_call_operand.hbm [shape: f32[2,16,200], index: 4, kind: output, shape index: {0}]   ;;  %s1423_s5 = inlined_call_operand.hbm [shape: f32[2,32,128], index: 5, kind: output, shape index: {1}]   ;;  %s1424_s6 = inlined_call_operand.hbm [shape: f32[2,16,128], index: 6, kind: output, shape index: {2}]  }
   0x1   :  { %1430 = sst [smem:[#allocation9_spill]] %s1418_s0 }
   0x2   :  { %1431 = sst [smem:[#allocation10_spill]] %s1419_s1 }
   0x3   :  { %1432 = sst [smem:[#allocation11_spill]] %s1420_s2 }
   0x4   :  { %12 = vsyncpa [#allocation3], 0 }
   0x5   :  { %14 = vsyncpa [#allocation3 + $0x1], 0 }
   0x6   :  { %15 = vsyncpa [#allocation5], 0 }
   0x7   :  { %17 = vsyncpa [#allocation5 + $0x1], 0  ;;  %s1145_s21 = smov 0   ;;  %s1147_s22 = smov 0  }
   0x8   :  { %s1149_s23 = smov 0   ;;  %s1151_s24 = smov 0  }
   0x9   :  { %s1153_s25 = smov 0   ;;  %s1155_s26 = smov 0  }
   0xa LB: > { %s834_s27 = sadd.s32 4294967295, %s1101_s26   ;;  %s1425_s28 = sadd.s32 4294967294, %s1101_s26   ;;  %s1101_s26 = sphi %s1155_s26, %s23_s26   ;;  %s1097_s25 = sphi %s1153_s25, %s1447_s25   ;;  %s1093_s24 = sphi %s1151_s24, %s1446_s24   ;;  %s1089_s23 = sphi %s1149_s23, %s1445_s23   ;;  %s1085_s22 = sphi %s1147_s22, %s1444_s22   ;;  %s1081_s21 = sphi %s1145_s21, %s1443_s21  }
   0xb   : > { %s35_s29 = sadd.s32 1, %s1097_s25  ;;  %s135_s30 = sadd.s32 1, %s1089_s23 }
   0xc   : > { %p37_p0 = scmp.ge.s32.totalorder %s35_s29, 2  ;;  %p145_p1 = scmp.ne.s32.totalorder %s1089_s23, %s1085_s22 }
   0xd   : > { %p146_p2 = scmp.eq.s32.totalorder %s834_s27, 1  ;;  %p151_p3 = scmp.ne.s32.totalorder %s1085_s22, %s1081_s21 }
   0xe   : > { %s1449_s29 = smov (%p37_p0, %s35_s29), 0  ;;  %p152_p5 = scmp.eq.s32.totalorder %s1425_s28, 1 }
   0xf   : > { %p1187_p4 = por %p146_p2, %p145_p1  ;;  %s130_s8 = ssub.s32 %s1097_s25, %s1449_s29 }
  0x10   : > { %p838_p6 = scmp.ge.s32.totalorder %s1101_s26, 1  ;;  %p133_p7 = scmp.eq.s32.totalorder %s130_s8, 0 }
  0x11   : > { %p1196_p8 = por %p152_p5, %p151_p3  ;;  %p244_p9 = scmp.lt.s32.totalorder %s1101_s26, 3 }
  0x12   : > { %s1202_s10 = scalar_select %p133_p7, %s1089_s23, %s135_s30  }
  0x13   : > { %p245_p10 = pnand %p838_p6, %p244_p9 }
  0x14   : > { %p289_p11 = scmp.lt.s32.totalorder (!%p245_p10), %s1093_s24, 1  ;;  %s1435_s0 = sld [smem:[#allocation9_spill]] (!%p245_p10) }
  0x15   : > { %248 = sbr.rel (%p245_p10) target bundleno = 394 (0x18a), region = 36  ;;  %s1436_s1 = sld [smem:[#allocation10_spill]] (!%p245_p10) }
  0x16   : > { %s1286_s20 = sand.u32 (!%p245_p10), 1, %s1085_s22   ;;  %s1437_s2 = sld [smem:[#allocation11_spill]] (!%p245_p10) }
  0x17   : > { %s1426_s30 = sshll.u32 (!%p245_p10), %s1286_s20, 5 }
  0x18   : > { %s280_s12 = scalar_lea.vmem (!%p245_p10), [#allocation4], %s1426_s30 }
  0x19   : > { %s672_s8 = sshll.u32 (!%p245_p10), %s280_s12, 4  ;;  %s673_s8 = int_to_ptr.vmem [resolvable:$true] %s672_s8 }
  0x1a   : > { %v325_v0 = vlaneseq  ;;  %v315_v1 = vld [vmem:[%s1421_s3] sm:$0xff]  ;;  %v1103_v2 = vmov 0   ;;  %v317_v3 = vld [vmem:[%s1421_s3 + $0x10] sm:$0xff]  ;;  %s290_s15 = scalar_select %p289_p11, %s1093_s24, 1  ;;  %vm341_vm1 = vcmask 130048   ;;  %v316_v11 = vld [vmem:[%s1421_s3 + $0x8] sm:$0xff] }
  0x1b   : > { %961 = vset.pattern.permute.xlu0 %v1103_v2  ;;  %962 = vset.pattern.permute.xlu1 %v1103_v2  ;;  %v309_v10 = vld [vmem:[%s1436_s1] sm:$0xff]  ;;  %v318_v12 = vld [vmem:[%s1421_s3 + $0x18] sm:$0xff]  ;;  %v310_v13 = vld [vmem:[%s1436_s1 + $0x8] sm:$0xff] }
  0x1c   : > { %v326_v4 = vand.u32 127, %v325_v0  ;;  %414 = vperm.xlu0 %961, %v315_v1   ;;  %424 = vperm.xlu1 %962, %v317_v3   ;;  %s885_s16 = sshll.u32 %s290_s15, 5  ;;  %v311_v14 = vld [vmem:[%s1436_s1 + $0x10] sm:$0xff]  ;;  %v312_v15 = vld [vmem:[%s1436_s1 + $0x18] sm:$0xff]  ;;  %v1262_v48 = vshrl.u32 %v325_v0, 7  ;;  %s886_s15 = sshll.u32 %s1093_s24, 5 }
  0x1d   : > { %s296_s19 = scalar_lea.vmem %s1435_s0, %s885_s16  ;;  %s1322_s16 = sand.u32 1, %s834_s27  }
  0x1e   : > { %v1213_v5 = vadd.s32 128, %v326_v4  ;;  %v1218_v6 = vld [vmem:[%s296_s19 + $0x10] sm:$0xff]  ;;  %v1220_v7 = vld [vmem:[%s296_s19 + $0x18] sm:$0xff]  ;;  %v1223_v8 = vld [vmem:[%s296_s19] sm:$0xff]  ;;  %v1265_v53 = vadd.s32 8, %v1262_v48  ;;  %v1268_v54 = vadd.s32 16, %v1262_v48 }
  0x1f   : > { %368 = vmatpush.msra.mxu0 %v1218_v6  ;;  %v1229_v9 = vld [vmem:[%s296_s19 + $0x8] sm:$0xff]  ;;  %v1271_v55 = vadd.s32 24, %v1262_v48  ;;  %s671_s19 = scalar_lea.hbm %s1423_s5, %s886_s15  ;;  %s1427_s13 = scalar_lea.sflag [#allocation5], %s1322_s16 }
  0x20   : > { %vm332_vm0 = vcmp.lt.s32.totalorder %v1213_v5, 200  ;;  %s674_s11 = sshll.u32 %s671_s19, 4  ;;  %s983_s0 = scalar_lea.hbm %s1423_s5, 64  ;;  %s675_s11 = int_to_ptr.hbm [resolvable:$true] %s674_s11 }
  0x21   : > { %848 = vmatpush.msk.msra.mxu1 %vm332_vm0, %v1220_v7  ;;  %369 = vmatpush.msra.mxu0 %v1223_v8  ;;  %s977_s14 = sshra.s32 %s675_s11, 4  ;;  %s978_s14 = int_to_ptr.hbm [resolvable:$true] %s977_s14 }
  0x22   : > { %844 = vmatmul.msk.f32.vlgmr.msra.gmra.mxu0 %vm341_vm1, %v309_v10  ;;  %s979_s28 = scalar_lea.hbm %s978_s14, 32  ;;  %p984_p1 = scmp.lt.s32.totalorder %s978_s14, %s1423_s5 }
  0x23   : > { %849 = vmatpush.msk.msra.mxu1 %vm332_vm0, %v1229_v9  ;;  %p980_p12 = scmp.ne.s32.totalorder %s978_s14, %s979_s28  ;;  %p985_p2 = scmp.lt.s32.totalorder %s983_s0, %s979_s28 }
  0x24   : > { %850 = vmatmul.msk.f32.vlgmr.msra.gmra.mxu1 %vm341_vm1, %v309_v10  ;;  %419 = vperm.xlu0 %961, %v316_v11  }
  0x25   : > { %429 = vperm.xlu1 %962, %v318_v12   ;;  %p981_p13 = pnand %p980_p12, %p1187_p4  ;;  %p986_p3 = por %p985_p2, %p984_p1 }
  0x27   : > { %p982_p0 = pneg %p981_p13 }
  0x29   : > { %p987_p5 = pnand %p986_p3, %p982_p0 }
  0x2a   : > { %845 = vmatmul.msk.f32.gmra.mxu0 %vm341_vm1, %v310_v13 }
  0x2c   : > { %851 = vmatmul.msk.f32.gmra.mxu1 %vm341_vm1, %v310_v13 }
  0x32   : > { %846 = vmatmul.msk.f32.gmra.mxu0 %vm341_vm1, %v311_v14 }
  0x34   : > { %852 = vmatmul.msk.f32.gmra.mxu1 %vm341_vm1, %v311_v14 }
  0x3a   : > { %847 = vmatmul.msk.f32.gmra.mxu0 %vm341_vm1, %v312_v15 }
  0x3c   : > { %853 = vmatmul.msk.f32.gmra.mxu1 %vm341_vm1, %v312_v15 }
  0x8e   : > { %v415_v20 = vpop.permute.xlu0 %414  ;;  %v425_v21 = vpop.permute.xlu1 %424 }
  0x96   : > { %v420_v24 = vpop.permute.xlu0 %419 }
  0x97   : > { %v430_v25 = vpop.permute.xlu1 %429 }
  0x9f   : > { %v371_v16 = vpop.f32.mrf.mxu0 }
  0xa0   : > { %v432_v28 = vsub.f32 %v415_v20, %v371_v16 }
  0xa1   : > { %v400_v17 = vpop.f32.mrf.mxu1 }
  0xa2   : > { %v433_v29 = vsub.f32 %v415_v20, %v400_v17 }
  0xa7   : > { %v374_v18 = vpop.f32.mrf.mxu0 }
  0xa8   : > { %v434_v32 = vsub.f32 %v420_v24, %v374_v18 }
  0xa9   : > { %v403_v19 = vpop.f32.mrf.mxu1 }
  0xaa   : > { %v435_v33 = vsub.f32 %v420_v24, %v403_v19  ;;  %v1104_v24 = vmov 1.0  }
  0xaf   : > { %v377_v22 = vpop.f32.mrf.mxu0 }
  0xb0   : > { %v436_v26 = vsub.f32 %v425_v21, %v377_v22 }
  0xb1   : > { %v406_v23 = vpop.f32.mrf.mxu1 }
  0xb2   : > { %v437_v27 = vsub.f32 %v425_v21, %v406_v23  ;;  %v440_v36 = vmin.f32 %v432_v28, %v436_v26 }
  0xb4   : > { %v449_v37 = vmin.f32 %v433_v29, %v437_v27 }
  0xb7   : > { %v380_v30 = vpop.f32.mrf.mxu0 }
  0xb8   : > { %v438_v34 = vsub.f32 %v430_v25, %v380_v30 }
  0xb9   : > { %v409_v31 = vpop.f32.mrf.mxu1 }
  0xba   : > { %v439_v35 = vsub.f32 %v430_v25, %v409_v31  ;;  %v441_v38 = vmin.f32 %v434_v32, %v438_v34  ;;  %v1105_v25 = vmov 0.0  }
  0xbc   : > { %v450_v39 = vmin.f32 %v435_v33, %v439_v35  ;;  %v442_v40 = vmin.f32 %v440_v36, %v441_v38 }
  0xbe   : > { %v451_v41 = vmin.f32 %v449_v37, %v450_v39  ;;  %v443_v42 = vrot.slane %v442_v40, 4 }
  0xc0   : > { %v452_v43 = vrot.slane %v451_v41, 4  ;;  %v444_v44 = vmin.f32 %v442_v40, %v443_v42 }
  0xc2   : > { %v453_v45 = vmin.f32 %v451_v41, %v452_v43  ;;  %v445_v46 = vrot.slane %v444_v44, 2  ;;  %v314_v41 = vld [vmem:[%s1437_s2 + $0x8] sm:$0xff] }
  0xc4   : > { %v454_v47 = vrot.slane %v453_v45, 2  ;;  %v446_v49 = vmin.f32 %v444_v44, %v445_v46 }
  0xc6   : > { %v455_v50 = vmin.f32 %v453_v45, %v454_v47  ;;  %v447_v51 = vrot.slane %v446_v49, 1 }
  0xc8   : > { %v456_v52 = vrot.slane %v455_v50, 1  ;;  %v448_v56 = vmin.f32 %v446_v49, %v447_v51 }
  0xca   : > { %v457_v57 = vmin.f32 %v455_v50, %v456_v52  ;;  %vm463_vm2 = vcmp.eq.f32.partialorder %v432_v28, %v448_v56  ;;  %vm465_vm3 = vcmp.eq.f32.partialorder %v434_v32, %v448_v56  ;;  %vm467_vm4 = vcmp.eq.f32.partialorder %v436_v26, %v448_v56  ;;  %v313_v32 = vld [vmem:[%s1437_s2] sm:$0xff] }
  0xcb   : > { %vm469_vm5 = vcmp.eq.f32.partialorder %v438_v34, %v448_v56  ;;  %v471_v58 = vsel %vm463_vm2, %v1262_v48, 32  ;;  %v473_v59 = vsel %vm465_vm3, %v1265_v53, 32  ;;  %v475_v60 = vsel %vm467_vm4, %v1268_v54, 32 }
  0xcc   : > { %v477_v61 = vsel %vm469_vm5, %v1271_v55, 32  ;;  %vm479_vm6 = vcmp.lt.s32.totalorder %v471_v58, %v475_v60  ;;  %vm464_vm8 = vcmp.eq.f32.partialorder %v433_v29, %v457_v57  ;;  %vm466_vm9 = vcmp.eq.f32.partialorder %v435_v33, %v457_v57 }
  0xcd   : > { %vm481_vm7 = vcmp.lt.s32.totalorder %v473_v59, %v477_v61  ;;  %v480_v62 = vsel %vm479_vm6, %v471_v58, %v475_v60  ;;  %vm468_vm10 = vcmp.eq.f32.partialorder %v437_v27, %v457_v57  ;;  %vm470_vm11 = vcmp.eq.f32.partialorder %v439_v35, %v457_v57 }
  0xce   : > { %v482_v63 = vsel %vm481_vm7, %v473_v59, %v477_v61  ;;  %v472_v0 = vsel %vm464_vm8, %v1262_v48, 32  ;;  %v474_v1 = vsel %vm466_vm9, %v1265_v53, 32  ;;  %v476_v2 = vsel %vm468_vm10, %v1268_v54, 32 }
  0xcf   : > { %vm483_vm12 = vcmp.lt.s32.totalorder %v480_v62, %v482_v63  ;;  %v478_v4 = vsel %vm470_vm11, %v1271_v55, 32  ;;  %vm494_vm13 = vcmp.lt.s32.totalorder %v472_v0, %v476_v2  ;;  %vm535_vm11 = vcmask 261120  }
  0xd0   : > { %v484_v3 = vsel %vm483_vm12, %v480_v62, %v482_v63  ;;  %v495_v11 = vsel %vm494_vm13, %v472_v0, %v476_v2  ;;  %vm496_vm14 = vcmp.lt.s32.totalorder %v474_v1, %v478_v4 }
  0xd1   : > { %v485_v10 = vrot.slane %v484_v3, 4  ;;  %v497_v12 = vsel %vm496_vm14, %v474_v1, %v478_v4 }
  0xd2   : > { %vm498_vm1 = vcmp.lt.s32.totalorder %v495_v11, %v497_v12 }
  0xd3   : > { %vm486_vm15 = vcmp.lt.s32.totalorder %v484_v3, %v485_v10  ;;  %v499_v13 = vsel %vm498_vm1, %v495_v11, %v497_v12 }
  0xd4   : > { %v487_v14 = vsel %vm486_vm15, %v484_v3, %v485_v10  ;;  %v500_v15 = vrot.slane %v499_v13, 4 }
  0xd5   : > { %v488_v16 = vrot.slane %v487_v14, 2 }
  0xd6   : > { %vm501_vm2 = vcmp.lt.s32.totalorder %v499_v13, %v500_v15 }
  0xd7   : > { %vm489_vm3 = vcmp.lt.s32.totalorder %v487_v14, %v488_v16  ;;  %v502_v18 = vsel %vm501_vm2, %v499_v13, %v500_v15 }
  0xd8   : > { %v490_v17 = vsel %vm489_vm3, %v487_v14, %v488_v16  ;;  %v503_v20 = vrot.slane %v502_v18, 2 }
  0xd9   : > { %v491_v19 = vrot.slane %v490_v17, 1 }
  0xda   : > { %vm504_vm5 = vcmp.lt.s32.totalorder %v502_v18, %v503_v20 }
  0xdb   : > { %vm492_vm4 = vcmp.lt.s32.totalorder %v490_v17, %v491_v19  ;;  %v505_v22 = vsel %vm504_vm5, %v502_v18, %v503_v20 }
  0xdc   : > { %v493_v21 = vsel %vm492_vm4, %v490_v17, %v491_v19  ;;  %v506_v23 = vrot.slane %v505_v22, 1 }
  0xdd   : > { %vm517_vm6 = vcmp.eq.s32.totalorder %v1271_v55, %v493_v21  ;;  %vm515_vm7 = vcmp.eq.s32.totalorder %v1268_v54, %v493_v21  ;;  %vm513_vm8 = vcmp.eq.s32.totalorder %v1265_v53, %v493_v21  ;;  %vm511_vm9 = vcmp.eq.s32.totalorder %v1262_v48, %v493_v21 }
  0xde   : > { %862 = vmatpush.msk.msra.mxu2 %vm517_vm6, %v1104_v24  ;;  %vm507_vm10 = vcmp.lt.s32.totalorder %v505_v22, %v506_v23  ;;  %v860_v26 = vsel %vm517_vm6, 1.0, %v1105_v25  ;;  %v858_v29 = vsel %vm515_vm7, 1.0, %v1105_v25  ;;  %v856_v30 = vsel %vm513_vm8, 1.0, %v1105_v25 }
  0xdf   : > { %v508_v27 = vsel %vm507_vm10, %v505_v22, %v506_v23  ;;  %v854_v31 = vsel %vm511_vm9, 1.0, %v1105_v25 }
  0xe0   : > { %863 = vmatpush.msk.msra.mxu2 %vm515_vm7, %v1104_v24  ;;  %v510_v28 = vsel %vm332_vm0, %v508_v27, 32 }
  0xe1   : > { %vm518_vm12 = vcmp.eq.s32.totalorder %v1271_v55, %v510_v28  ;;  %vm516_vm13 = vcmp.eq.s32.totalorder %v1268_v54, %v510_v28  ;;  %vm514_vm14 = vcmp.eq.s32.totalorder %v1265_v53, %v510_v28  ;;  %vm512_vm15 = vcmp.eq.s32.totalorder %v1262_v48, %v510_v28 }
  0xe2   : > { %864 = vmatpush.msk.msra.mxu2 %vm513_vm8, %v1104_v24  ;;  %v861_v33 = vsel %vm518_vm12, 1.0, %v1105_v25  ;;  %868 = vmatpush.msk.msra.mxu3 %vm518_vm12, %v1104_v24  ;;  %v859_v34 = vsel %vm516_vm13, 1.0, %v1105_v25  ;;  %v857_v35 = vsel %vm514_vm14, 1.0, %v1105_v25  ;;  %v855_v36 = vsel %vm512_vm15, 1.0, %v1105_v25 }
  0xe3   : > { %v609_v37 = vadd.f32 %v861_v33, %v860_v26  ;;  %v608_v38 = vadd.f32 %v859_v34, %v858_v29  ;;  %v607_v39 = vadd.f32 %v857_v35, %v856_v30  ;;  %v606_v40 = vadd.f32 %v855_v36, %v854_v31 }
  0xe4   : > { %865 = vmatpush.msk.msra.mxu2 %vm511_vm9, %v1104_v24  ;;  %869 = vmatpush.msk.msra.mxu3 %vm516_vm13, %v1104_v24 }
  0xe5   : > { %866 = vmatmul.msk.f32.vlgmr.msra.gmra.mxu2 %vm535_vm11, %v313_v32  ;;  %623 = vst [vmem:[%s280_s12 + $0x18] sm:$0xff] %v609_v37 }
  0xe6   : > { %870 = vmatpush.msk.msra.mxu3 %vm514_vm14, %v1104_v24  ;;  %622 = vst [vmem:[%s280_s12 + $0x10] sm:$0xff] %v608_v38 }
  0xe7   : > { %621 = vst [vmem:[%s280_s12 + $0x8] sm:$0xff] %v607_v39 }
  0xe8   : > { %871 = vmatpush.msk.msra.mxu3 %vm512_vm15, %v1104_v24  ;;  %620 = vst [vmem:[%s280_s12] sm:$0xff] %v606_v40 }
  0xe9   : > { %872 = vmatmul.msk.f32.vlgmr.msra.gmra.mxu3 %vm535_vm11, %v313_v32 }
  0xed   : > { %867 = vmatmul.msk.f32.gmra.mxu2 %vm535_vm11, %v314_v41 }
  0xf1   : > { %873 = vmatmul.msk.f32.gmra.mxu3 %vm535_vm11, %v314_v41 }
  0xf2   : > { %990 = shalt.err (!%p987_p5)
}
  0xf3   : > { %s1428_s12 = smov 128   ;;  %s1429_s18 = smov 8   ;;  %v338_v44 = vsel %vm332_vm0, %v1229_v9, 0.0  ;;  %v340_v50 = vsel %vm332_vm0, %v1220_v7, 0.0 }
  0xf4   : > { %890 = dma.vmem_to_hbm [thread:$0]  (%p1187_p4), %s673_s8, 512, %s675_s11, %s1427_s13, %s1428_s12, %s1428_s12, %s1429_s18  }
  0xf5   : > { %s1438_s1 = sshll.u32 %s1286_s20, 5  ;;  %s654_s8 = scalar_lea.hbm %s1422_s4, %s886_s15 }
  0xf6   : > { %s273_s30 = scalar_lea.vmem [#allocation2], %s1438_s1  ;;  %s841_s11 = sshll.u32 %s1286_s20, 4 }
  0xf7   : > { %s655_s0 = sshll.u32 %s273_s30, 4  ;;  %s657_s14 = sshll.u32 %s654_s8, 4  ;;  %s1357_s0 = int_to_ptr.vmem [resolvable:$true] %s655_s0  ;;  %s658_s14 = int_to_ptr.hbm [resolvable:$true] %s657_s14 }
  0xf8   : > { %s888_s27 = sshll.u32 %s1093_s24, 4  ;;  %s287_s15 = scalar_lea.vmem [#allocation6], %s841_s11 }
  0xf9   : > { %s688_s28 = scalar_lea.hbm %s1424_s6, %s888_s27  ;;  %s631_s19 = scalar_lea.sflag [#allocation3], %s1286_s20 }
  0xfa   : > { %s1005_s8 = sshra.s32 %s658_s14, 4  ;;  %s1011_s11 = scalar_lea.hbm %s1422_s4, 64  ;;  %s1006_s8 = int_to_ptr.hbm [resolvable:$true] %s1005_s8 }
  0xfb   : > { %s1007_s13 = scalar_lea.hbm %s1006_s8, 32  ;;  %p1012_p10 = scmp.lt.s32.totalorder %s1006_s8, %s1422_s4 }
  0xfc   : > { %p1008_p6 = scmp.ne.s32.totalorder %s1006_s8, %s1007_s13  ;;  %p1013_p11 = scmp.lt.s32.totalorder %s1011_s11, %s1007_s13 }
  0xfe   : > { %p1009_p7 = pnand %p1008_p6, %p1187_p4  ;;  %p1014_p12 = por %p1013_p11, %p1012_p10 }
 0x100   : > { %p1010_p9 = pneg %p1009_p7 }
 0x102   : > { %p1015_p13 = pnand %p1014_p12, %p1010_p9 }
 0x168   : > { %v559_v42 = vpop.f32.mrf.mxu2 }
 0x169   : > { %588 = vst [vmem:[%s273_s30] sm:$0xff] %v559_v42  ;;  %v592_v43 = vsub.f32 %v1223_v8, %v559_v42 }
 0x16b   : > { %v596_v46 = vmul.f32 %v592_v43, %v592_v43 }
 0x16c   : > { %v582_v45 = vpop.f32.mrf.mxu3 }
 0x16d   : > { %589 = vst [vmem:[%s273_s30 + $0x8] sm:$0xff] %v582_v45  ;;  %v593_v47 = vsub.f32 %v338_v44, %v582_v45 }
 0x16f   : > { %v597_v48 = vmul.f32 %v593_v47, %v593_v47 }
 0x170   : > { %v562_v49 = vpop.f32.mrf.mxu2 }
 0x171   : > { %590 = vst [vmem:[%s273_s30 + $0x10] sm:$0xff] %v562_v49  ;;  %v610_v8 = vadd.f32 %v597_v48, %v596_v46  ;;  %v594_v9 = vsub.f32 %v1218_v6, %v562_v49 }
 0x173   : > { %628 = vst [vmem:[%s287_s15] sm:$0xff] %v610_v8  ;;  %v598_v52 = vmul.f32 %v594_v9, %v594_v9 }
 0x174   : > { %v585_v51 = vpop.f32.mrf.mxu3 }
 0x175   : > { %v595_v53 = vsub.f32 %v340_v50, %v585_v51  ;;  %591 = vst [vmem:[%s273_s30 + $0x18] sm:$0xff] %v585_v51 }
 0x177   : > { %v599_v54 = vmul.f32 %v595_v53, %v595_v53 }
 0x178   : > { %1018 = shalt.err (!%p1015_p13)
}
 0x179   : > { %s1108_s20 = smov 256   ;;  %s1109_s30 = smov 16   ;;  %v611_v5 = vadd.f32 %v599_v54, %v598_v52 }
 0x17a   : > { %889 = dma.vmem_to_hbm [thread:$0]  (%p1187_p4), %s1357_s0, 512, %s658_s14, %s631_s19, %s1108_s20, %s1108_s20, %s1109_s30  }
 0x17b   : > { %s689_s27 = sshll.u32 %s287_s15, 4  ;;  %s691_s17 = sshll.u32 %s688_s28, 4  ;;  %629 = vst [vmem:[%s287_s15 + $0x8] sm:$0xff] %v611_v5  ;;  %s690_s27 = int_to_ptr.vmem [resolvable:$true] %s689_s27  ;;  %s692_s17 = int_to_ptr.hbm [resolvable:$true] %s691_s17 }
 0x17c   : > { %s1033_s12 = sshra.s32 %s692_s17, 4  ;;  %s1039_s1 = scalar_lea.hbm %s1424_s6, 32  ;;  %s1034_s12 = int_to_ptr.hbm [resolvable:$true] %s1033_s12 }
 0x17d   : > { %s1035_s2 = scalar_lea.hbm %s1034_s12, 16  ;;  %p1040_p3 = scmp.lt.s32.totalorder %s1034_s12, %s1424_s6 }
 0x17e   : > { %p1036_p0 = scmp.ne.s32.totalorder %s1034_s12, %s1035_s2  ;;  %p1041_p5 = scmp.lt.s32.totalorder %s1039_s1, %s1035_s2 }
 0x180   : > { %p1037_p1 = pnand %p1036_p0, %p1187_p4  ;;  %p1042_p6 = por %p1041_p5, %p1040_p3 }
 0x182   : > { %p1038_p2 = pneg %p1037_p1 }
 0x184   : > { %p1043_p7 = pnand %p1042_p6, %p1038_p2 }
 0x186   : > { %1046 = shalt.err (!%p1043_p7)
}
 0x187   : > { %s1439_s0 = smov 8   ;;  %s1440_s14 = smov 128  }
 0x188   : > { %s1441_s15 = scalar_lea.sflag [#allocation5], %s1322_s16 }
 0x189   : > { %891 = dma.vmem_to_hbm [thread:$0]  (%p1187_p4), %s690_s27, 256, %s692_s17, %s1441_s15, %s1440_s14, %s1440_s14, %s1439_s0  }
 0x18a PF: > { %p905_p9 = scmp.ge.s32.totalorder %s1101_s26, 2  ;;  %s706_s28 = sand.u32 1, %s1081_s21  }
 0x18b   : > { %s707_s19 = scalar_lea.sflag [#allocation3], %s706_s28 }
 0x18c   : > { %p896_p10 = pnand %p905_p9, %p1196_p8 }
 0x18e   : > { %p897_p11 = pneg %p896_p10 }
 0x190   : > { %1072 = dma.done.wait (%p897_p11), %s707_s19, 512  }
 0x191   : > { %1074 = vsyncadd (%p897_p11), %s707_s19, 4294966784  ;;  %s1442_s7 = sadd.s32 4294967294, %s1101_s26  }
 0x192   : > { %s716_s11 = sand.u32 1, %s1442_s7  }
 0x193   : > { %s717_s20 = scalar_lea.sflag [#allocation5], %s716_s11 }
 0x194   : > { %1076 = dma.done.wait (%p897_p11), %s717_s20, 768  }
 0x195   : > { %1078 = vsyncadd (%p897_p11), %s717_s20, 4294966528  ;;  %s23_s26 = sadd.s32 1, %s1101_s26   ;;  %s1443_s21 = smov %s1085_s22 }
 0x196   : > { %p20_p4 = scmp.ge.s32.totalorder %s23_s26, 4   ;;  %s1444_s22 = smov %s1089_s23 }
 0x197   : > { %s1445_s23 = smov %s1202_s10  ;;  %s1446_s24 = smov %s1097_s25 }
 0x198   : > { %s1447_s25 = smov %s1449_s29  ;;  %22 = sbr.rel (!%p20_p4) target bundleno = 10 (0xa), region = 107 }
 0x19d   :  { %733 = vsyncpa [#allocation3], 1 }
 0x19e   :  { %735 = vsyncpa [#allocation3 + $0x1], 1 }
 0x19f   :  { %736 = vsyncpa [#allocation5], 1 }
 0x1a0   :  { %738 = vsyncpa [#allocation5 + $0x1], 1 }

</bundles_post_ra>
